<compile_context>
chip_gen: v5e
topology: v5e:2x2
jax: 0.10.0
libtpu: 0.0.40
codegen_flags: <defaults>
</compile_context>

<pallas_src>
import math

import jax
import jax.numpy as jnp
from jax.experimental import pallas as pl
from jax.experimental.pallas import tpu as pltpu

THRESHOLD = 1e-4


def interaction_kernel(rgn_ref, wrd_ref, bias_ref, colsum_ref, s2_ref, s3_ref):
    """One grid step reduces TB samples.

    rgn_ref   : (TB, Nr, D)  bf16/f32  region features
    wrd_ref   : (TB, Nw, D)  bf16/f32  word features
    bias_ref  : (TB, Nw)     f32       additive word mask (0 valid / -1e30 masked)
    colsum_ref: (TB, D)      f32       sum over regions of rgn (lane-dense output)
    s2_ref    : (TB, 1)      f32       sum(softmax(rgn rgn^T/sqrt(D)) @ rgn)   (cell 2)
    s3_ref    : (TB, 1)      f32       sum(softmax(rgn wrd^T/sqrt(D)) @ wrd)   (cell 3)
    """
    rgn = rgn_ref[...]
    wrd = wrd_ref[...]
    bias = bias_ref[...]

    TB, Nr, D = rgn.shape
    Nw = wrd.shape[1]
    inv_sqrt_d = 1.0 / math.sqrt(D)

    # f32 elementwise reductions of the (bf16) tiles (VPU math stays f32).
    rgn32 = rgn.astype(jnp.float32)
    wrd32 = wrd.astype(jnp.float32)
    rgn_rowsum = jnp.sum(rgn32, axis=-1)          # (TB, Nr)  sum over D
    wrd_rowsum = jnp.sum(wrd32, axis=-1)          # (TB, Nw)
    colsum = jnp.sum(rgn32, axis=1)               # (TB, D)   sum over regions

    # ---- cell 2: intra-modal reasoning ----
    # Only column sums of the softmax matter for the final sum(1).mean(1);
    # the normalization is fused into the scalar via an EUP reciprocal.
    s2 = jnp.einsum("bnd,bmd->bnm", rgn, rgn,
                    preferred_element_type=jnp.float32) * inv_sqrt_d
    m2 = jnp.max(s2, axis=-1, keepdims=True)
    e2 = jnp.exp(s2 - m2)                                      # (TB, Nr, Nr)
    l2 = jnp.sum(e2, axis=-1)                                  # (TB, Nr)
    num2 = jnp.sum(e2 * rgn_rowsum[:, None, :], axis=-1)       # (TB, Nr)
    S2 = jnp.sum(num2 * pl.reciprocal(l2, approx=True), axis=-1, keepdims=True)

    # ---- cell 3: cross-modal refinement (word mask as additive bias) ----
    s3 = jnp.einsum("bnd,bmd->bnm", rgn, wrd,
                    preferred_element_type=jnp.float32) * inv_sqrt_d
    s3 = s3 + bias[:, None, :]
    m3 = jnp.max(s3, axis=-1, keepdims=True)
    e3 = jnp.exp(s3 - m3)                                      # (TB, Nr, Nw)
    l3 = jnp.sum(e3, axis=-1)                                  # (TB, Nr)
    num3 = jnp.sum(e3 * wrd_rowsum[:, None, :], axis=-1)       # (TB, Nr)
    S3 = jnp.sum(num3 * pl.reciprocal(l3, approx=True), axis=-1, keepdims=True)

    colsum_ref[...] = colsum
    s2_ref[...] = S2
    s3_ref[...] = S3


def _choose_tb(batch, tb_req):
    """Pick a batch tile. Prefer a copy-free split (tb | B or B <= tb)."""
    tb_req = max(int(tb_req), 1)
    if batch <= tb_req:
        return batch, False                 # single step, full-batch block
    best = 0
    t = 8
    while t <= tb_req:
        if batch % t == 0:
            best = t
        t += 8
    if best:
        return best, False                  # multiple of 8 dividing B
    tb = tb_req - (tb_req % 8) if tb_req >= 8 else 8
    return tb, True                          # fallback: pad batch


def interaction_module(rgn, img, wrd, stc, stc_lens, params, *,
                       tb=256, input_dtype=jnp.bfloat16, vmem_limit_bytes=None):
    """rgn:(B,Nr,D) img:(B,D) wrd:(B,Nw,D) stc:(B,D) stc_lens:(B,) int -> (B,)"""
    B, Nr, D = rgn.shape
    Nw = wrd.shape[1]

    # bf16 operands in HBM; MXU accumulates in f32 inside the kernel.
    rgn_h = rgn.astype(input_dtype)
    wrd_h = wrd.astype(input_dtype)

    # Word mask as a tiny additive bias built once in the wrapper.
    bias = jnp.where(jnp.arange(Nw)[None, :] < stc_lens.astype(jnp.int32)[:, None],
                     0.0, -1e30).astype(jnp.float32)                      # (B, Nw)

    tb_eff, need_pad = _choose_tb(B, tb)
    if need_pad:
        # TODO(synk): this fallback materializes padded copies of rgn/wrd in HBM;
        # pick tb | B (or B <= tb) to take the copy-free path.
        b_pad = ((B + tb_eff - 1) // tb_eff) * tb_eff
        pad = lambda x: jnp.pad(x, ((0, b_pad - B),) + ((0, 0),) * (x.ndim - 1))
        rgn_h, wrd_h, bias = pad(rgn_h), pad(wrd_h), pad(bias)
    else:
        b_pad = B
    n_steps = b_pad // tb_eff

    # Scoped-VMEM request: double-buffered inputs + f32 temporaries, clamped so a
    # v7x TensorCore (64 MiB physical) still compiles; v5e/v6e may raise the cap.
    in_bytes = jnp.dtype(input_dtype).itemsize
    est = (2 * tb_eff * (Nr + Nw) * D * in_bytes          # double-buffered rgn/wrd
           + 2 * tb_eff * Nw * 4                          # bias
           + 2 * tb_eff * (D + 2) * 4                     # outputs
           + 4 * tb_eff * Nr * (Nr + Nw) * 4              # e2/e3-class temporaries
           + 2 * tb_eff * (Nr + Nw) * D * 4)              # f32 casts of the tile
    if vmem_limit_bytes is None:
        vmem_limit_bytes = int(min(max(2 * est, 32 * 1024 * 1024), 64 * 1024 * 1024))

    colsum, s2, s3 = pl.pallas_call(
        interaction_kernel,
        out_shape=(
            jax.ShapeDtypeStruct((b_pad, D), jnp.float32),
            jax.ShapeDtypeStruct((b_pad, 1), jnp.float32),
            jax.ShapeDtypeStruct((b_pad, 1), jnp.float32),
        ),
        grid_spec=pltpu.PrefetchScalarGridSpec(
            num_scalar_prefetch=0,
            grid=(n_steps,),
            in_specs=[
                pl.BlockSpec((tb_eff, Nr, D), lambda i: (i, 0, 0)),   # rgn (bf16)
                pl.BlockSpec((tb_eff, Nw, D), lambda i: (i, 0, 0)),   # wrd (bf16)
                pl.BlockSpec((tb_eff, Nw), lambda i: (i, 0)),         # word-mask bias
            ],
            out_specs=(
                pl.BlockSpec((tb_eff, D), lambda i: (i, 0)),          # colsum (lane-dense)
                pl.BlockSpec((tb_eff, 1), lambda i: (i, 0)),          # S2
                pl.BlockSpec((tb_eff, 1), lambda i: (i, 0)),          # S3
            ),
        ),
        compiler_params=pltpu.CompilerParams(
            dimension_semantics=("parallel",),        # v7x: shard steps over both TCs
            vmem_limit_bytes=vmem_limit_bytes),
    )(rgn_h, wrd_h, bias)

    colsum = colsum[:B]                               # (B, D)
    S2 = s2[:B, 0]                                    # (B,)
    S3 = s3[:B, 0]                                    # (B,)

    # ---- tiny per-sample math stays in the wrapper (batched XLA matmuls) ----
    g = jax.nn.sigmoid(stc @ params["Wg"] + img @ params["Wi"] + params["bg"])   # (B, D)
    pooled = colsum / Nr                              # router pooling reuses kernel output
    h = jax.nn.relu(jnp.einsum("bd,cdh->bch", pooled, params["Wr1"])
                    + params["br1"][None])                                        # (B, 4, H)
    logit = jnp.sum(h * params["Wr2"][None], axis=-1) + params["br2"][None]       # (B, 4)
    probs = jax.nn.sigmoid(logit)
    psum = jnp.sum(probs, axis=-1)                                                # (B,)
    gate = (psum < THRESHOLD).astype(jnp.float32)
    pn = probs / (psum + 1e-8)[:, None]                                           # (B, 4)

    S0 = jnp.sum(colsum, axis=-1)                     # sum(emb0) = sum(rgn)
    S1 = jnp.sum(colsum * g, axis=-1)                 # sum(rgn * g)

    out = ((pn[:, 0] + gate) * S0 + pn[:, 1] * S1 + pn[:, 2] * S2 + pn[:, 3] * S3) / D
    return out


# ----------------------------- pure-JAX reference ----------------------------
def reference(rgn, img, wrd, stc, stc_lens, params):
    B, Nr, D = rgn.shape
    Nw = wrd.shape[1]
    inv_sqrt_d = 1.0 / math.sqrt(D)

    emb0 = rgn
    g = jax.nn.sigmoid(stc @ params["Wg"] + img @ params["Wi"] + params["bg"])   # (B, D)
    emb1 = rgn * g[:, None, :]

    s2 = jnp.einsum("bnd,bmd->bnm", rgn, rgn) * inv_sqrt_d
    emb2 = jnp.einsum("bnm,bmd->bnd", jax.nn.softmax(s2, axis=-1), rgn)

    s3 = jnp.einsum("bnd,bmd->bnm", rgn, wrd) * inv_sqrt_d
    mask = jnp.arange(Nw)[None, None, :] < stc_lens[:, None, None]
    s3 = jnp.where(mask, s3, -1e30)
    emb3 = jnp.einsum("bnm,bmd->bnd", jax.nn.softmax(s3, axis=-1), wrd)

    pooled = jnp.mean(rgn, axis=1)                                               # (B, D)
    probs = []
    for i in range(4):
        h = jax.nn.relu(pooled @ params["Wr1"][i] + params["br1"][i])
        logit = jnp.sum(h * params["Wr2"][i], axis=-1) + params["br2"][i]
        probs.append(jax.nn.sigmoid(logit))                                      # (B,)
    psum = sum(probs)
    gate = (psum < THRESHOLD).astype(jnp.float32)
    pn = [p / (psum + 1e-8) for p in probs]

    embs = [emb0, emb1, emb2, emb3]
    res = sum(pn[i][:, None, None] * embs[i] for i in range(4)) + gate[:, None, None] * rgn
    return res.sum(axis=1).mean(axis=1)


if __name__ == "__main__":
    B, Nr, Nw, D, H = 16, 8, 12, 32, 32
    key = jax.random.PRNGKey(0)
    ks = jax.random.split(key, 12)

    rgn = jax.random.normal(ks[0], (B, Nr, D), jnp.float32)
    img = jax.random.normal(ks[1], (B, D), jnp.float32)
    wrd = jax.random.normal(ks[2], (B, Nw, D), jnp.float32)
    stc = jax.random.normal(ks[3], (B, D), jnp.float32)
    stc_lens = jax.random.randint(ks[11], (B,), 1, Nw + 1).astype(jnp.int32)

    params = {
        "Wg": 0.1 * jax.random.normal(ks[4], (D, D), jnp.float32),
        "Wi": 0.1 * jax.random.normal(ks[5], (D, D), jnp.float32),
        "bg": 0.1 * jax.random.normal(ks[6], (D,), jnp.float32),
        "Wr1": 0.1 * jax.random.normal(ks[7], (4, D, H), jnp.float32),
        "br1": 0.1 * jax.random.normal(ks[8], (4, H), jnp.float32),
        "Wr2": 0.1 * jax.random.normal(ks[9], (4, H), jnp.float32),
        "br2": 0.1 * jax.random.normal(ks[10], (4,), jnp.float32),
    }

    # tb=8 exercises a multi-step (copy-free) grid at this toy size; real workloads
    # should keep the larger default tb sized against the per-generation VMEM budget.
    out = interaction_module(rgn, img, wrd, stc, stc_lens, params, tb=8)
    out = jax.block_until_ready(out)

    # Reference on the same bf16-quantized features the kernel consumes.
    rgn_q = rgn.astype(jnp.bfloat16).astype(jnp.float32)
    wrd_q = wrd.astype(jnp.bfloat16).astype(jnp.float32)
    ref = reference(rgn_q, img, wrd_q, stc, stc_lens, params)

    assert out.shape == (B,)
    assert jnp.allclose(out, ref, rtol=2e-2, atol=2e-2), (out, ref)
    print("KERNEL_OK")
</pallas_src>

<mosaic_0001>
module attributes {stable_mosaic.version = 11 : i64} {
  func.func @interaction_kernel(%arg0: i32, %arg1: memref<8x8x32xbf16, #tpu.memory_space<vmem>>, %arg2: memref<8x12x32xbf16, #tpu.memory_space<vmem>>, %arg3: memref<8x12xf32, #tpu.memory_space<vmem>>, %arg4: memref<8x32xf32, #tpu.memory_space<vmem>>, %arg5: memref<8x1xf32, #tpu.memory_space<vmem>>, %arg6: memref<8x1xf32, #tpu.memory_space<vmem>>) attributes {dimension_semantics = [#tpu.dimension_semantics<parallel>], iteration_bounds = array<i64: 2>, scalar_prefetch = 0 : i64, scratch_operands = 0 : i64, tpu.core_type = #tpu.core_type<tc>, window_params = [{transform_indices = @transform_0, window_bounds = array<i64: 8, 8, 32>}, {transform_indices = @transform_1, window_bounds = array<i64: 8, 12, 32>}, {transform_indices = @transform_2, window_bounds = array<i64: 8, 12>}, {transform_indices = @transform_3, window_bounds = array<i64: 8, 32>}, {transform_indices = @transform_4, window_bounds = array<i64: 8, 1>}, {transform_indices = @transform_5, window_bounds = array<i64: 8, 1>}]} {
    %c0 = arith.constant 0 : index
    %c0_0 = arith.constant 0 : index
    %c0_1 = arith.constant 0 : index
    %0 = vector.load %arg1[%c0, %c0_0, %c0_1] : memref<8x8x32xbf16, #tpu.memory_space<vmem>>, vector<8x8x32xbf16>
    %c0_2 = arith.constant 0 : index
    %c0_3 = arith.constant 0 : index
    %c0_4 = arith.constant 0 : index
    %1 = vector.load %arg2[%c0_2, %c0_3, %c0_4] : memref<8x12x32xbf16, #tpu.memory_space<vmem>>, vector<8x12x32xbf16>
    %c0_5 = arith.constant 0 : index
    %c0_6 = arith.constant 0 : index
    %2 = vector.load %arg3[%c0_5, %c0_6] : memref<8x12xf32, #tpu.memory_space<vmem>>, vector<8x12xf32>
    %3 = arith.extf %0 : vector<8x8x32xbf16> to vector<8x8x32xf32>
    %4 = arith.extf %1 : vector<8x12x32xbf16> to vector<8x12x32xf32>
    %cst = arith.constant dense<0.000000e+00> : vector<8x8xf32>
    %5 = vector.multi_reduction <add>, %3, %cst [2] : vector<8x8x32xf32> to vector<8x8xf32>
    %cst_7 = arith.constant dense<0.000000e+00> : vector<8x12xf32>
    %6 = vector.multi_reduction <add>, %4, %cst_7 [2] : vector<8x12x32xf32> to vector<8x12xf32>
    %cst_8 = arith.constant dense<0.000000e+00> : vector<8x32xf32>
    %7 = vector.multi_reduction <add>, %3, %cst_8 [1] : vector<8x8x32xf32> to vector<8x32xf32>
    "tpu.trace_start"() <{level = 10 : i32, message = "bnd,bmd->bnm"}> : () -> ()
    %cst_9 = arith.constant dense<0.000000e+00> : vector<8x8x8xf32>
    %8 = tpu.matmul %0, %0, %cst_9 {dimension_numbers = #tpu.dot_dimension_numbers<[2], [2], [1], [1], [0, 0, 0, 1, 1, 1], [0], [0]>} : vector<8x8x32xbf16>, vector<8x8x32xbf16>, vector<8x8x8xf32> -> vector<8x8x8xf32>
    "tpu.trace_stop"() : () -> ()
    %cst_10 = arith.constant 0.176776692 : f32
    %9 = vector.broadcast %cst_10 : f32 to vector<8x8x8xf32>
    %10 = arith.mulf %8, %9 : vector<8x8x8xf32>
    %cst_11 = arith.constant dense<0xFF800000> : vector<8x8xf32>
    %11 = vector.multi_reduction <maximumf>, %10, %cst_11 [2] : vector<8x8x8xf32> to vector<8x8xf32>
    %12 = vector.shape_cast %11 : vector<8x8xf32> to vector<8x8x1xf32>
    %13 = vector.broadcast %12 : vector<8x8x1xf32> to vector<8x8x8xf32>
    %14 = arith.subf %10, %13 : vector<8x8x8xf32>
    %15 = math.exp %14 : vector<8x8x8xf32>
    %cst_12 = arith.constant dense<0.000000e+00> : vector<8x8xf32>
    %16 = vector.multi_reduction <add>, %15, %cst_12 [2] : vector<8x8x8xf32> to vector<8x8xf32>
    %17 = vector.shape_cast %5 : vector<8x8xf32> to vector<8x1x8xf32>
    %18 = vector.broadcast %17 : vector<8x1x8xf32> to vector<8x8x8xf32>
    %19 = arith.mulf %15, %18 : vector<8x8x8xf32>
    %cst_13 = arith.constant dense<0.000000e+00> : vector<8x8xf32>
    %20 = vector.multi_reduction <add>, %19, %cst_13 [2] : vector<8x8x8xf32> to vector<8x8xf32>
    %21 = tpu.reciprocal %16 {approx = true} : vector<8x8xf32> -> vector<8x8xf32>
    %22 = arith.mulf %20, %21 : vector<8x8xf32>
    %cst_14 = arith.constant dense<0.000000e+00> : vector<8xf32>
    %23 = vector.multi_reduction <add>, %22, %cst_14 [1] : vector<8x8xf32> to vector<8xf32>
    %24 = vector.shape_cast %23 : vector<8xf32> to vector<8x1xf32>
    "tpu.trace_start"() <{level = 10 : i32, message = "bnd,bmd->bnm"}> : () -> ()
    %cst_15 = arith.constant dense<0.000000e+00> : vector<8x8x12xf32>
    %25 = tpu.matmul %0, %1, %cst_15 {dimension_numbers = #tpu.dot_dimension_numbers<[2], [2], [1], [1], [0, 0, 0, 1, 1, 1], [0], [0]>} : vector<8x8x32xbf16>, vector<8x12x32xbf16>, vector<8x8x12xf32> -> vector<8x8x12xf32>
    "tpu.trace_stop"() : () -> ()
    %cst_16 = arith.constant 0.176776692 : f32
    %26 = vector.broadcast %cst_16 : f32 to vector<8x8x12xf32>
    %27 = arith.mulf %25, %26 : vector<8x8x12xf32>
    %28 = vector.shape_cast %2 : vector<8x12xf32> to vector<8x1x12xf32>
    %29 = vector.broadcast %28 : vector<8x1x12xf32> to vector<8x8x12xf32>
    %30 = arith.addf %27, %29 : vector<8x8x12xf32>
    %cst_17 = arith.constant dense<0xFF800000> : vector<8x8xf32>
    %31 = vector.multi_reduction <maximumf>, %30, %cst_17 [2] : vector<8x8x12xf32> to vector<8x8xf32>
    %32 = vector.shape_cast %31 : vector<8x8xf32> to vector<8x8x1xf32>
    %33 = vector.broadcast %32 : vector<8x8x1xf32> to vector<8x8x12xf32>
    %34 = arith.subf %30, %33 : vector<8x8x12xf32>
    %35 = math.exp %34 : vector<8x8x12xf32>
    %cst_18 = arith.constant dense<0.000000e+00> : vector<8x8xf32>
    %36 = vector.multi_reduction <add>, %35, %cst_18 [2] : vector<8x8x12xf32> to vector<8x8xf32>
    %37 = vector.shape_cast %6 : vector<8x12xf32> to vector<8x1x12xf32>
    %38 = vector.broadcast %37 : vector<8x1x12xf32> to vector<8x8x12xf32>
    %39 = arith.mulf %35, %38 : vector<8x8x12xf32>
    %cst_19 = arith.constant dense<0.000000e+00> : vector<8x8xf32>
    %40 = vector.multi_reduction <add>, %39, %cst_19 [2] : vector<8x8x12xf32> to vector<8x8xf32>
    %41 = tpu.reciprocal %36 {approx = true} : vector<8x8xf32> -> vector<8x8xf32>
    %42 = arith.mulf %40, %41 : vector<8x8xf32>
    %cst_20 = arith.constant dense<0.000000e+00> : vector<8xf32>
    %43 = vector.multi_reduction <add>, %42, %cst_20 [1] : vector<8x8xf32> to vector<8xf32>
    %44 = vector.shape_cast %43 : vector<8xf32> to vector<8x1xf32>
    %c0_21 = arith.constant 0 : index
    %c0_22 = arith.constant 0 : index
    %45 = vector.load %arg4[%c0_21, %c0_22] : memref<8x32xf32, #tpu.memory_space<vmem>>, vector<8x32xf32>
    tpu.vector_store %arg4[%c0_21, %c0_22], %7 {strides = array<i32>} : memref<8x32xf32, #tpu.memory_space<vmem>>, vector<8x32xf32>,
    %c0_23 = arith.constant 0 : index
    %c0_24 = arith.constant 0 : index
    %46 = vector.load %arg5[%c0_23, %c0_24] : memref<8x1xf32, #tpu.memory_space<vmem>>, vector<8x1xf32>
    tpu.vector_store %arg5[%c0_23, %c0_24], %24 {strides = array<i32>} : memref<8x1xf32, #tpu.memory_space<vmem>>, vector<8x1xf32>,
    %c0_25 = arith.constant 0 : index
    %c0_26 = arith.constant 0 : index
    %47 = vector.load %arg6[%c0_25, %c0_26] : memref<8x1xf32, #tpu.memory_space<vmem>>, vector<8x1xf32>
    tpu.vector_store %arg6[%c0_25, %c0_26], %44 {strides = array<i32>} : memref<8x1xf32, #tpu.memory_space<vmem>>, vector<8x1xf32>,
    return
  }
  func.func @transform_0(%arg0: i32) -> (i32, i32, i32) {
    %c0_i32 = arith.constant 0 : i32
    %c0_i32_0 = arith.constant 0 : i32
    %c0_i32_1 = arith.constant 0 : i32
    return %arg0, %c0_i32, %c0_i32_0 : i32, i32, i32
  }
  func.func @transform_1(%arg0: i32) -> (i32, i32, i32) {
    %c0_i32 = arith.constant 0 : i32
    %c0_i32_0 = arith.constant 0 : i32
    %c0_i32_1 = arith.constant 0 : i32
    return %arg0, %c0_i32, %c0_i32_0 : i32, i32, i32
  }
  func.func @transform_2(%arg0: i32) -> (i32, i32) {
    %c0_i32 = arith.constant 0 : i32
    %c0_i32_0 = arith.constant 0 : i32
    return %arg0, %c0_i32 : i32, i32
  }
  func.func @transform_3(%arg0: i32) -> (i32, i32) {
    %c0_i32 = arith.constant 0 : i32
    %c0_i32_0 = arith.constant 0 : i32
    return %arg0, %c0_i32 : i32, i32
  }
  func.func @transform_4(%arg0: i32) -> (i32, i32) {
    %c0_i32 = arith.constant 0 : i32
    %c0_i32_0 = arith.constant 0 : i32
    return %arg0, %c0_i32 : i32, i32
  }
  func.func @transform_5(%arg0: i32) -> (i32, i32) {
    %c0_i32 = arith.constant 0 : i32
    %c0_i32_0 = arith.constant 0 : i32
    return %arg0, %c0_i32 : i32, i32
  }
}

</mosaic_0001>

<bundles_post_ra>
// kernel: tpu_custom_call.1
= control target key start
LH: loop header
LB: loop body
LE: loop exit
PB: predicated region body
PF: predicated region fallthrough
CT: control target
= control target key end

     0   :  { %11 = vsyncpa [#allocation3], 0  ;;  %s2273_s0 = inlined_call_operand.vmem [shape: bf16[16,8,32], index: 0, kind: input, shape index: {}]   ;;  %s2274_s1 = inlined_call_operand.vmem [shape: bf16[16,12,32], index: 1, kind: input, shape index: {}]   ;;  %s2275_s2 = inlined_call_operand.vmem [shape: f32[16,12], index: 2, kind: input, shape index: {}]   ;;  %s2276_s3 = inlined_call_operand.hbm [shape: f32[16,32], index: 3, kind: output, shape index: {0}]   ;;  %s2277_s4 = inlined_call_operand.vmem [shape: f32[16,1], index: 4, kind: output, shape index: {1}]   ;;  %s2278_s5 = inlined_call_operand.vmem [shape: f32[16,1], index: 5, kind: output, shape index: {2}]  }
   0x1   :  { %13 = vsyncpa [#allocation3 + $0x1], 0  ;;  %s1731_s18 = smov 0   ;;  %s1733_s19 = smov 0  }
   0x2   :  { %s1735_s20 = smov 0   ;;  %s1737_s21 = smov 0  }
   0x3 LB: > { %s1752_s22 = sadd.s32 4294967295, %s1699_s21   ;;  %s1460_s23 = sadd.s32 4294967294, %s1699_s21   ;;  %s1699_s21 = sphi %s1737_s21, %s2284_s21   ;;  %s1695_s20 = sphi %s1735_s20, %s2283_s20   ;;  %s1691_s19 = sphi %s1733_s19, %s2282_s19   ;;  %s1687_s18 = sphi %s1731_s18, %s2281_s18  }
   0x4   : > { %s1756_s24 = sadd.s32 1, %s1699_s21   ;;  %s104_s25 = sadd.s32 1, %s1695_s20 }
   0x5   : > { %s101_s26 = ssub.s32 %s1699_s21, %s1756_s24  ;;  %p114_p0 = scmp.ne.s32.totalorder %s1695_s20, %s1691_s19 }
   0x6   : > { %p102_p1 = scmp.eq.s32.totalorder %s101_s26, 0  ;;  %p115_p2 = scmp.eq.s32.totalorder %s1752_s22, 1 }
   0x7   : > { %p120_p3 = scmp.ne.s32.totalorder %s1691_s19, %s1687_s18  ;;  %p121_p4 = scmp.eq.s32.totalorder %s1460_s23, 1 }
   0x8   : > { %s1767_s27 = scalar_select %p102_p1, %s1695_s20, %s104_s25  }
   0x9   : > { %p1769_p5 = por %p115_p2, %p114_p0  ;;  %p1773_p6 = por %p121_p4, %p120_p3 }
   0xa   : > { %p1463_p7 = scmp.ge.s32.totalorder %s1699_s21, 1  ;;  %p217_p8 = scmp.lt.s32.totalorder %s1699_s21, 3 }
   0xc   : > { %p218_p9 = pnand %p1463_p7, %p217_p8 }
   0xd   : > { %s1780_s30 = sshll.u32 (!%p218_p9), %s1752_s22, 3  ;;  %p276_p11 = scmp.lt.s32.totalorder (!%p218_p9), %s1752_s22, 1 }
   0xe   : > { %221 = sbr.rel (%p218_p9) target bundleno = 610 (0x262), region = 32  ;;  %p264_p10 = scmp.lt.s32.totalorder (!%p218_p9), %s1780_s30, 15 }
   0xf   : > { %s1657_s16 = scalar_lea.hbm (!%p218_p9), %s2276_s3, 16 }
  0x13   : > { %s265_s6 = scalar_select %p264_p10, %s1780_s30, 15  ;;  %vm338_vm0 = vcmask 261120   ;;  %vm366_vm1 = vcmask 257024   ;;  %vm596_vm2 = vcmask 64512   ;;  %vm1033_vm3 = vcmask 97280  }
  0x14   : > { %s2286_s22 = smov (!%p276_p11, %s1752_s22), 1  ;;  %vm1125_vm4 = vcmask 130112   ;;  %vm687_vm5 = vcmask 1041409   ;;  %vm688_vm6 = vcmask 1042434   ;;  %vm690_vm7 = vcmask 1043459  }
  0x15   : > { %s1466_s7 = sshll.u32 %s265_s6, 2  ;;  %s1525_s8 = sshll.u32 %s265_s6, 3  ;;  %vm692_vm8 = vcmask 1044484   ;;  %vm694_vm9 = vcmask 1045509   ;;  %vm696_vm10 = vcmask 1046534   ;;  %vm698_vm11 = vcmask 1047559  }
  0x16   : > { %s267_s11 = scalar_lea.vmem %s2273_s0, %s1466_s7  ;;  %s1796_s14 = scalar_lea.vmem %s2274_s1, %s1525_s8 }
  0x17   : > { %v1787_v0 = vld [vmem:[%s267_s11] sm:$0xf]  ;;  %v1789_v1 = vld [vmem:[%s267_s11 + $0x4] sm:$0xf]  ;;  %v1791_v2 = vld [vmem:[%s267_s11 + $0x8] sm:$0xf]  ;;  %s1318_s7 = scalar_lea.hbm %s2276_s3, %s1780_s30 }
  0x18   : > { %v461_v3 = vsel %vm338_vm0, %v1787_v0, 0  ;;  %v477_v4 = vsel %vm338_vm0, %v1789_v1, 0  ;;  %v493_v5 = vsel %vm338_vm0, %v1791_v2, 0  ;;  %v1804_v6 = vld [vmem:[%s267_s11 + $0xc] sm:$0xf]  ;;  %v316_v48 = vunpack.c.l.bf16 %v1791_v2  ;;  %s1974_s15 = sshll.u32 %s2286_s22, 3 }
  0x19   : > { %470 = vmatpush.bf16.xpose.msra.mxu0 %v461_v3  ;;  %486 = vmatpush.bf16.xpose.msra.mxu1 %v477_v4  ;;  %v509_v7 = vsel %vm338_vm0, %v1804_v6, 0  ;;  %v1808_v8 = vld [vmem:[%s267_s11 + $0x10] sm:$0xf]  ;;  %v1810_v9 = vld [vmem:[%s267_s11 + $0x14] sm:$0xf]  ;;  %v314_v49 = vunpack.c.l.bf16 %v1787_v0  ;;  %v317_v54 = vunpack.c.l.bf16 %v1804_v6  ;;  %v315_v55 = vunpack.c.l.bf16 %v1789_v1  ;;  %s279_s23 = scalar_lea.vmem %s2275_s2, %s1974_s15  ;;  %s248_s22 = sand.u32 1, %s1691_s19  }
  0x1a   : > { %502 = vmatpush.bf16.xpose.msra.mxu2 %v493_v5  ;;  %518 = vmatpush.bf16.xpose.msra.mxu3 %v509_v7  ;;  %v525_v10 = vsel %vm338_vm0, %v1808_v8, 0  ;;  %v541_v11 = vsel %vm338_vm0, %v1810_v9, 0  ;;  %v1816_v12 = vld [vmem:[%s267_s11 + $0x18] sm:$0xf]  ;;  %v1818_v13 = vld [vmem:[%s267_s11 + $0x1c] sm:$0xf]  ;;  %v318_v50 = vunpack.c.l.bf16 %v1808_v8  ;;  %v319_v56 = vunpack.c.l.bf16 %v1810_v9 }
  0x1b   : > { %v557_v14 = vsel %vm338_vm0, %v1816_v12, 0  ;;  %v573_v15 = vsel %vm338_vm0, %v1818_v13, 0  ;;  %v1488_v16 = vld [vmem:[%s1796_s14 + $0x8] sm:$0xf]  ;;  %v1527_v17 = vld [vmem:[%s1796_s14 + $0x8] sm:$0x30]  ;;  %v321_v60 = vunpack.c.l.bf16 %v1818_v13  ;;  %v320_v61 = vunpack.c.l.bf16 %v1816_v12 }
  0x1c   : > { %v1489_v18 = vor.u32 %v1527_v17, %v1488_v16  ;;  %v1483_v19 = vld [vmem:[%s1796_s14] sm:$0xf]  ;;  %v1526_v20 = vld [vmem:[%s1796_s14] sm:$0x30]  ;;  %v1493_v21 = vld [vmem:[%s1796_s14 + $0x10] sm:$0xf] }
  0x1d   : > { %v1484_v22 = vor.u32 %v1526_v20, %v1483_v19  ;;  %v1528_v23 = vld [vmem:[%s1796_s14 + $0x10] sm:$0x30]  ;;  %v1498_v24 = vld [vmem:[%s1796_s14 + $0x18] sm:$0xf]  ;;  %v1529_v25 = vld [vmem:[%s1796_s14 + $0x18] sm:$0x30] }
  0x1e   : > { %v1494_v26 = vor.u32 %v1528_v23, %v1493_v21  ;;  %v1499_v27 = vor.u32 %v1529_v25, %v1498_v24  ;;  %v852_v28 = vsel %vm338_vm0, %v1489_v18, 0  ;;  %v1503_v32 = vld [vmem:[%s1796_s14 + $0x20] sm:$0xf]  ;;  %v1530_v33 = vld [vmem:[%s1796_s14 + $0x20] sm:$0x30]  ;;  %v1868_v51 = vsel %vm338_vm0, %v316_v48, 0.0 }
  0x1f   : > { %v831_v29 = vsel %vm338_vm0, %v1484_v22, 0  ;;  %v1508_v34 = vld [vmem:[%s1796_s14 + $0x28] sm:$0xf]  ;;  %v1531_v35 = vld [vmem:[%s1796_s14 + $0x28] sm:$0x30]  ;;  %v1504_v40 = vor.u32 %v1530_v33, %v1503_v32  ;;  %v1871_v52 = vsel %vm338_vm0, %v314_v49, 0.0  ;;  %346 = vadd.xlane.f32.xlu1 %v1868_v51 }
  0x20   : > { %1473 = vmatmul.msk.bf16.vlgmr.msra.gmra.mxu0 %vm338_vm0, %v1787_v0  ;;  %1474 = vmatmul.msk.bf16.vlgmr.msra.gmra.mxu1 %vm338_vm0, %v1789_v1  ;;  %v873_v30 = vsel %vm338_vm0, %v1494_v26, 0  ;;  %v894_v31 = vsel %vm338_vm0, %v1499_v27, 0  ;;  %v1513_v36 = vld [vmem:[%s1796_s14 + $0x30] sm:$0xf]  ;;  %v1532_v37 = vld [vmem:[%s1796_s14 + $0x30] sm:$0x30]  ;;  %v1509_v41 = vor.u32 %v1531_v35, %v1508_v34 }
  0x21   : > { %534 = vmatpush.bf16.xpose.msrb.mxu0 %v525_v10  ;;  %550 = vmatpush.bf16.xpose.msrb.mxu1 %v541_v11  ;;  %v1518_v38 = vld [vmem:[%s1796_s14 + $0x38] sm:$0xf]  ;;  %v1533_v39 = vld [vmem:[%s1796_s14 + $0x38] sm:$0x30]  ;;  %v1514_v42 = vor.u32 %v1532_v37, %v1513_v36  ;;  %v915_v44 = vsel %vm338_vm0, %v1504_v40, 0  ;;  %v1874_v53 = vsel %vm338_vm0, %v318_v50, 0.0 }
  0x22   : > { %566 = vmatpush.bf16.xpose.msrb.mxu2 %v557_v14  ;;  %582 = vmatpush.bf16.xpose.msrb.mxu3 %v573_v15  ;;  %v1519_v43 = vor.u32 %v1533_v39, %v1518_v38  ;;  %v936_v45 = vsel %vm338_vm0, %v1509_v41, 0  ;;  %v1883_v57 = vsel %vm338_vm0, %v317_v54, 0.0  ;;  %v1886_v58 = vsel %vm338_vm0, %v315_v55, 0.0  ;;  %v297_v62 = vld [vmem:[%s1796_s14] sm:$0xf]  ;;  %s1464_s25 = sshll.u32 %s248_s22, 3 }
  0x23   : > { %1475 = vmatmul.msk.bf16.vlgmr.msra.gmra.mxu2 %vm338_vm0, %v1791_v2  ;;  %1476 = vmatmul.msk.bf16.vlgmr.msra.gmra.mxu3 %vm338_vm0, %v1804_v6  ;;  %v957_v46 = vsel %vm338_vm0, %v1514_v42, 0  ;;  %v1889_v59 = vsel %vm338_vm0, %v319_v56, 0.0  ;;  %v322_v63 = vunpack.c.l.bf16 %v297_v62  ;;  %v1906_v3 = vsel %vm338_vm0, %v321_v60, 0.0  ;;  %v299_v5 = vld [vmem:[%s1796_s14 + $0x8] sm:$0xf]  ;;  %s250_s8 = scalar_lea.vmem [#allocation2], %s1464_s25 }
  0x24   : > { %v978_v47 = vsel %vm338_vm0, %v1519_v43, 0  ;;  %340 = vadd.xlane.f32.xlu0 %v1871_v52  ;;  %352 = vadd.xlane.f32.xlu2 %v1874_v53  ;;  %v1909_v4 = vsel %vm338_vm0, %v320_v61, 0.0  ;;  %v300_v7 = vld [vmem:[%s1796_s14 + $0xc] sm:$0x3]  ;;  %v302_v16 = vld [vmem:[%s1796_s14 + $0x14] sm:$0x3] }
  0x25   : > { %v325_v10 = vunpack.c.l.bf16 %v300_v7  ;;  %v301_v17 = vld [vmem:[%s1796_s14 + $0x10] sm:$0xf]  ;;  %v303_v18 = vld [vmem:[%s1796_s14 + $0x18] sm:$0xf]  ;;  %v327_v19 = vunpack.c.l.bf16 %v302_v16  ;;  %v305_v25 = vld [vmem:[%s1796_s14 + $0x20] sm:$0xf] }
  0x26   : > { %v326_v20 = vunpack.c.l.bf16 %v301_v17  ;;  %v328_v21 = vunpack.c.l.bf16 %v303_v18  ;;  %v306_v26 = vld [vmem:[%s1796_s14 + $0x24] sm:$0x3]  ;;  %v309_v32 = vld [vmem:[%s1796_s14 + $0x30] sm:$0xf]  ;;  %v311_v39 = vld [vmem:[%s1796_s14 + $0x38] sm:$0xf] }
  0x27   : > { %349 = vadd.xlane.f32.xlu1 %v1883_v57  ;;  %v373_v15 = vsel %vm366_vm1, %v325_v10, 0.0  ;;  %v379_v22 = vsel %vm366_vm1, %v327_v19, 0.0  ;;  %v331_v27 = vunpack.c.l.bf16 %v306_v26  ;;  %v334_v35 = vunpack.c.l.bf16 %v309_v32  ;;  %v310_v40 = vld [vmem:[%s1796_s14 + $0x34] sm:$0x3]  ;;  %v312_v41 = vld [vmem:[%s1796_s14 + $0x3c] sm:$0x3] }
  0x28   : > { %v376_v23 = vsel %vm338_vm0, %v326_v20, 0.0  ;;  %v382_v24 = vsel %vm338_vm0, %v328_v21, 0.0  ;;  %v336_v42 = vunpack.c.l.bf16 %v311_v39  ;;  %v335_v43 = vunpack.c.l.bf16 %v310_v40  ;;  %s1320_s9 = sshll.u32 %s250_s8, 4  ;;  %s1322_s10 = sshll.u32 %s1318_s7, 4  ;;  %s1321_s9 = int_to_ptr.vmem [resolvable:$true] %s1320_s9  ;;  %s1323_s10 = int_to_ptr.hbm [resolvable:$true] %s1322_s10 }
  0x29   : > { %861 = vmatpush.bf16.xpose.msra.mxu1 %v852_v28  ;;  %840 = vmatpush.bf16.xpose.msra.mxu0 %v831_v29  ;;  %v391_v29 = vsel %vm366_vm1, %v331_v27, 0.0  ;;  %v400_v38 = vsel %vm338_vm0, %v334_v35, 0.0  ;;  %s1300_s11 = scalar_lea.sflag [#allocation3], %s248_s22  ;;  %s1651_s30 = sshra.s32 %s1323_s10, 4  ;;  %s1652_s30 = int_to_ptr.hbm [resolvable:$true] %s1651_s30 }
  0x2a   : > { %882 = vmatpush.bf16.xpose.msra.mxu2 %v873_v30  ;;  %903 = vmatpush.bf16.xpose.msra.mxu3 %v894_v31  ;;  %v308_v30 = vld [vmem:[%s1796_s14 + $0x2c] sm:$0x3]  ;;  %v307_v31 = vld [vmem:[%s1796_s14 + $0x28] sm:$0xf]  ;;  %s1653_s12 = scalar_lea.hbm %s1652_s30, 8  ;;  %p1658_p1 = scmp.lt.s32.totalorder %s1652_s30, %s2276_s3 }
  0x2b   : > { %v333_v33 = vunpack.c.l.bf16 %v308_v30  ;;  %v332_v34 = vunpack.c.l.bf16 %v307_v31  ;;  %p1654_p12 = scmp.ne.s32.totalorder %s1652_s30, %s1653_s12  ;;  %p1659_p2 = scmp.lt.s32.totalorder %s1657_s16, %s1653_s12 }
  0x2c   : > { %343 = vadd.xlane.f32.xlu0 %v1886_v58  ;;  %355 = vadd.xlane.f32.xlu2 %v1889_v59 }
  0x2d   : > { %v397_v36 = vsel %vm366_vm1, %v333_v33, 0.0  ;;  %v394_v37 = vsel %vm338_vm0, %v332_v34, 0.0  ;;  %p1655_p13 = pnand %p1654_p12, %p1769_p5  ;;  %p1660_p3 = por %p1659_p2, %p1658_p1 }
  0x2f   : > { %361 = vadd.xlane.f32.xlu1 %v1906_v3  ;;  %p1656_p0 = pneg %p1655_p13 }
  0x30   : > { %1477 = vmatmul.msk.bf16.vlgmr.msrb.gmra.mxu0 %vm338_vm0, %v1808_v8  ;;  %1478 = vmatmul.msk.bf16.vlgmr.msrb.gmra.mxu1 %vm338_vm0, %v1810_v9 }
  0x31   : > { %924 = vmatpush.bf16.xpose.msrb.mxu0 %v915_v44  ;;  %945 = vmatpush.bf16.xpose.msrb.mxu1 %v936_v45  ;;  %v337_v44 = vunpack.c.l.bf16 %v312_v41  ;;  %v406_v45 = vsel %vm338_vm0, %v336_v42, 0.0  ;;  %p1661_p4 = pnand %p1660_p3, %p1656_p0 }
  0x33   : > { %1479 = vmatmul.msk.bf16.vlgmr.msrb.gmra.mxu2 %vm338_vm0, %v1816_v12  ;;  %1480 = vmatmul.msk.bf16.vlgmr.msrb.gmra.mxu3 %vm338_vm0, %v1818_v13 }
  0x34   : > { %966 = vmatpush.bf16.xpose.msrb.mxu2 %v957_v46  ;;  %987 = vmatpush.bf16.xpose.msrb.mxu3 %v978_v47  ;;  %v403_v46 = vsel %vm366_vm1, %v335_v43, 0.0  ;;  %v409_v47 = vsel %vm366_vm1, %v337_v44, 0.0 }
  0x35   : > { %358 = vadd.xlane.f32.xlu0 %v1909_v4 }
  0x40   : > { %1485 = vmatmul.msk.bf16.vlgmr.msra.gmra.mxu0 %vm338_vm0, %v1787_v0  ;;  %1490 = vmatmul.msk.bf16.vlgmr.msra.gmra.mxu1 %vm338_vm0, %v1789_v1  ;;  %v363_v0 = vsel %vm338_vm0, %v322_v63, 0.0  ;;  %v298_v1 = vld [vmem:[%s1796_s14 + $0x4] sm:$0x3] }
  0x41   : > { %364 = vadd.xlane.f32.xlu2 %v363_v0 }
  0x43   : > { %1495 = vmatmul.msk.bf16.vlgmr.msra.gmra.mxu2 %vm338_vm0, %v1791_v2  ;;  %1500 = vmatmul.msk.bf16.vlgmr.msra.gmra.mxu3 %vm338_vm0, %v1804_v6  ;;  %v324_v2 = vunpack.c.l.bf16 %v299_v5  ;;  %v323_v6 = vunpack.c.l.bf16 %v298_v1 }
  0x45   : > { %v370_v11 = vsel %vm338_vm0, %v324_v2, 0.0  ;;  %v367_v14 = vsel %vm366_vm1, %v323_v6, 0.0 }
  0x46   : > { %371 = vadd.xlane.f32.xlu1 %v370_v11  ;;  %368 = vadd.xlane.f32.xlu0 %v367_v14 }
  0x49   : > { %374 = vadd.xlane.f32.xlu2 %v373_v15 }
  0x4e   : > { %380 = vadd.xlane.f32.xlu1 %v379_v22  ;;  %377 = vadd.xlane.f32.xlu0 %v376_v23 }
  0x50   : > { %1505 = vmatmul.msk.bf16.vlgmr.msrb.gmra.mxu0 %vm338_vm0, %v1808_v8  ;;  %1510 = vmatmul.msk.bf16.vlgmr.msrb.gmra.mxu1 %vm338_vm0, %v1810_v9  ;;  %v304_v8 = vld [vmem:[%s1796_s14 + $0x1c] sm:$0x3]  ;;  %v330_v9 = vunpack.c.l.bf16 %v305_v25 }
  0x51   : > { %383 = vadd.xlane.f32.xlu2 %v382_v24  ;;  %v1988_v24 = vld [vmem:[%s279_s23] sm:$0xff] }
  0x52   : > { %v1002_v27 = vrot.slane %v1988_v24, 1 }
  0x53   : > { %1515 = vmatmul.msk.bf16.vlgmr.msrb.gmra.mxu2 %vm338_vm0, %v1816_v12  ;;  %1520 = vmatmul.msk.bf16.vlgmr.msrb.gmra.mxu3 %vm338_vm0, %v1818_v13  ;;  %v329_v12 = vunpack.c.l.bf16 %v304_v8  ;;  %v388_v13 = vsel %vm338_vm0, %v330_v9, 0.0 }
  0x54   : > { %v1010_v30 = vperm.slane %v1002_v27, 0 }
  0x55   : > { %v385_v28 = vsel %vm366_vm1, %v329_v12, 0.0 }
  0x56   : > { %389 = vadd.xlane.f32.xlu1 %v388_v13  ;;  %386 = vadd.xlane.f32.xlu0 %v385_v28 }
  0x59   : > { %392 = vadd.xlane.f32.xlu2 %v391_v29  ;;  %v1009_v29 = vperm.slane %v1988_v24, 0 }
  0x5e   : > { %398 = vadd.xlane.f32.xlu1 %v397_v36  ;;  %395 = vadd.xlane.f32.xlu0 %v394_v37  ;;  %v1004_v37 = vrot.slane %v1988_v24, 3 }
  0x60   : > { %v1012_v44 = vperm.slane %v1004_v37, 0 }
  0x61   : > { %401 = vadd.xlane.f32.xlu2 %v400_v38  ;;  %v1003_v38 = vrot.slane %v1988_v24, 2 }
  0x66   : > { %407 = vadd.xlane.f32.xlu1 %v406_v45  ;;  %404 = vadd.xlane.f32.xlu0 %v403_v46  ;;  %v1011_v45 = vperm.slane %v1003_v38, 0 }
  0x69   : > { %410 = vadd.xlane.f32.xlu2 %v409_v47 }
  0x92   : > { %v1990_v25 = vpop.xlane.xlu1 %346 }
  0x97   : > { %v1992_v8 = vpop.xlane.xlu0 %340  ;;  %v1998_v12 = vpop.xlane.xlu2 %352 }
  0x9a   : > { %v2002_v35 = vpop.xlane.xlu1 %349 }
  0x9d   : > { %v472_v48 = vpop.f32.mrf.mxu0  ;;  %v488_v49 = vpop.f32.mrf.mxu1 }
  0x9e   : > { %v1952_v50 = vmul.f32 0.17677669, %v472_v48  ;;  %v1954_v54 = vmul.f32 0.17677669, %v488_v49 }
  0x9f   : > { %v2004_v36 = vpop.xlane.xlu0 %343  ;;  %v2008_v39 = vpop.xlane.xlu2 %355 }
  0xa0   : > { %v600_v55 = vsel %vm596_vm2, %v1954_v54, -inf  ;;  %v597_v56 = vsel %vm596_vm2, %v1952_v50, -inf }
  0xa1   : > { %601 = vmax.xlane.f32.xlu1 %v600_v55  ;;  %598 = vmax.xlane.f32.xlu0 %v597_v56 }
  0xa5   : > { %v474_v0 = vpop.f32.mrf.mxu0  ;;  %v490_v5 = vpop.f32.mrf.mxu1 }
  0xa6   : > { %v504_v60 = vpop.f32.mrf.mxu2  ;;  %v520_v61 = vpop.f32.mrf.mxu3 }
  0xa7   : > { %v1960_v62 = vmul.f32 0.17677669, %v504_v60  ;;  %v1962_v63 = vmul.f32 0.17677669, %v520_v61  ;;  %v677_v60 = vlaneseq  ;;  %v2018_v61 = vpop.xlane.xlu1 %361 }
  0xa8   : > { %v2020_v0 = vpop.xlane.xlu0 %358 }
  0xa9   : > { %v603_v1 = vsel %vm596_vm2, %v1960_v62, -inf  ;;  %v606_v7 = vsel %vm596_vm2, %v1962_v63, -inf }
  0xaa   : > { %604 = vmax.xlane.f32.xlu1 %v603_v1  ;;  %607 = vmax.xlane.f32.xlu0 %v606_v7 }
  0xad   : > { %v536_v10 = vpop.f32.mrf.mxu0  ;;  %v552_v11 = vpop.f32.mrf.mxu1 }
  0xae   : > { %v506_v2 = vpop.f32.mrf.mxu2  ;;  %v522_v6 = vpop.f32.mrf.mxu3  ;;  %v1970_v14 = vmul.f32 0.17677669, %v536_v10  ;;  %v1972_v15 = vmul.f32 0.17677669, %v552_v11 }
  0xaf   : > { %v1006_v2 = vrot.slane %v1988_v24, 5  ;;  %v1005_v6 = vrot.slane %v1988_v24, 4 }
  0xb0   : > { %v612_v16 = vsel %vm596_vm2, %v1972_v15, -inf  ;;  %v609_v17 = vsel %vm596_vm2, %v1970_v14, -inf }
  0xb1   : > { %610 = vmax.xlane.f32.xlu2 %v609_v17 }
  0xb2   : > { %613 = vmax.xlane.f32.xlu1 %v612_v16  ;;  %v2032_v16 = vand.u32 127, %v677_v60 }
  0xb4   : > { %v365_v7 = vpop.xlane.xlu2 %364  ;;  %v2035_v17 = vadd.s32 4294967288, %v2032_v16 }
  0xb5   : > { %v538_v22 = vpop.f32.mrf.mxu0  ;;  %v554_v23 = vpop.f32.mrf.mxu1 }
  0xb6   : > { %v568_v18 = vpop.f32.mrf.mxu2  ;;  %v584_v19 = vpop.f32.mrf.mxu3  ;;  %v1014_v22 = vperm.slane %v1006_v2, 0  ;;  %v1013_v23 = vperm.slane %v1005_v6, 0 }
  0xb7   : > { %v1984_v20 = vmul.f32 0.17677669, %v568_v18  ;;  %v1986_v21 = vmul.f32 0.17677669, %v584_v19 }
  0xb9   : > { %v615_v26 = vsel %vm596_vm2, %v1984_v20, -inf  ;;  %v618_v9 = vsel %vm596_vm2, %v1986_v21, -inf }
  0xba   : > { %616 = vmax.xlane.f32.xlu0 %v615_v26  ;;  %619 = vmax.xlane.f32.xlu2 %v618_v9 }
  0xbc   : > { %v375_v37 = vpop.xlane.xlu2 %374 }
  0xbd   : > { %v842_v31 = vpop.f32.mrf.mxu0  ;;  %v863_v32 = vpop.f32.mrf.mxu1 }
  0xbe   : > { %v570_v13 = vpop.f32.mrf.mxu2  ;;  %v586_v28 = vpop.f32.mrf.mxu3  ;;  %v993_v33 = vmul.f32 0.17677669, %v842_v31  ;;  %v994_v34 = vmul.f32 0.17677669, %v863_v32  ;;  %v1007_v31 = vrot.slane %v1988_v24, 6  ;;  %v1008_v32 = vrot.slane %v1988_v24, 7 }
  0xbf   : > { %v1122_v28 = vperm.slane %v365_v7, %v2032_v16 }
  0xc0   : > { %v2010_v40 = vadd.f32 %v1009_v29, %v993_v33  ;;  %v2012_v41 = vadd.f32 %v1010_v30, %v994_v34  ;;  %v372_v29 = vpop.xlane.xlu1 %371  ;;  %v369_v30 = vpop.xlane.xlu0 %368 }
  0xc1   : > { %v1127_v33 = vperm.slane %v372_v29, %v2032_v16  ;;  %v1124_v34 = vperm.slane %v369_v30, %v2035_v17 }
  0xc2   : > { %v1034_v42 = vsel %vm1033_vm3, %v2010_v40, -inf  ;;  %v1037_v43 = vsel %vm1033_vm3, %v2012_v41, -inf }
  0xc3   : > { %1035 = vmax.xlane.f32.xlu2 %v1034_v42  ;;  %1038 = vmax.xlane.f32.xlu0 %v1037_v43  ;;  %v1128_v43 = vperm.slane %v375_v37, %v2035_v17  ;;  %v2052_v24 = vsel %vm1125_vm4, %v1124_v34, %v1122_v28 }
  0xc5   : > { %v844_v55 = vpop.f32.mrf.mxu0  ;;  %v865_v56 = vpop.f32.mrf.mxu1 }
  0xc6   : > { %v884_v46 = vpop.f32.mrf.mxu2  ;;  %v905_v47 = vpop.f32.mrf.mxu3 }
  0xc7   : > { %v995_v48 = vmul.f32 0.17677669, %v884_v46  ;;  %v996_v49 = vmul.f32 0.17677669, %v905_v47  ;;  %v2055_v46 = vsel %vm1125_vm4, %v1128_v43, %v1127_v33  ;;  %v1015_v47 = vperm.slane %v1007_v31, 0 }
  0xc8   : > { %v381_v6 = vpop.xlane.xlu1 %380 }
  0xc9   : > { %v2022_v5 = vadd.f32 %v1012_v44, %v996_v49  ;;  %v2024_v1 = vadd.f32 %v1011_v45, %v995_v48  ;;  %v1016_v48 = vperm.slane %v1008_v32, 0 }
  0xcb   : > { %v1043_v10 = vsel %vm1033_vm3, %v2022_v5, -inf  ;;  %v1040_v11 = vsel %vm1033_vm3, %v2024_v1, -inf }
  0xcc   : > { %1044 = vmax.xlane.f32.xlu1 %v1043_v10  ;;  %1041 = vmax.xlane.f32.xlu2 %v1040_v11  ;;  %v378_v10 = vpop.xlane.xlu0 %377 }
  0xcd   : > { %v926_v26 = vpop.f32.mrf.mxu0  ;;  %v947_v9 = vpop.f32.mrf.mxu1 }
  0xce   : > { %v886_v18 = vpop.f32.mrf.mxu2  ;;  %v907_v19 = vpop.f32.mrf.mxu3  ;;  %v997_v27 = vmul.f32 0.17677669, %v926_v26  ;;  %v998_v13 = vmul.f32 0.17677669, %v947_v9 }
  0xcf   : > { %v1131_v19 = vperm.slane %v381_v6, %v2035_v17 }
  0xd0   : > { %v2042_v38 = vadd.f32 %v1014_v22, %v998_v13  ;;  %v2044_v42 = vadd.f32 %v1013_v23, %v997_v27  ;;  %v1130_v22 = vperm.slane %v378_v10, %v2032_v16  ;;  %v384_v23 = vpop.xlane.xlu2 %383  ;;  %v390_v30 = vpop.xlane.xlu1 %389 }
  0xd1   : > { %v1133_v29 = vperm.slane %v384_v23, %v2032_v16  ;;  %v1136_v32 = vperm.slane %v390_v30, %v2032_v16 }
  0xd2   : > { %v1049_v44 = vsel %vm1033_vm3, %v2042_v38, -inf  ;;  %v1046_v45 = vsel %vm1033_vm3, %v2044_v42, -inf  ;;  %v2068_v27 = vsel %vm1125_vm4, %v1131_v19, %v1130_v22 }
  0xd3   : > { %1047 = vmax.xlane.f32.xlu0 %v1046_v45 }
  0xd4   : > { %1050 = vmax.xlane.f32.xlu2 %v1049_v44  ;;  %v387_v31 = vpop.xlane.xlu0 %386 }
  0xd5   : > { %v928_v60 = vpop.f32.mrf.mxu0  ;;  %v949_v2 = vpop.f32.mrf.mxu1  ;;  %v1134_v33 = vperm.slane %v387_v31, %v2035_v17 }
  0xd6   : > { %v968_v49 = vpop.f32.mrf.mxu2  ;;  %v989_v55 = vpop.f32.mrf.mxu3 }
  0xd7   : > { %v999_v56 = vmul.f32 0.17677669, %v968_v49  ;;  %v1000_v7 = vmul.f32 0.17677669, %v989_v55  ;;  %v2075_v43 = vsel %vm1125_vm4, %v1134_v33, %v1133_v29 }
  0xd8   : > { %v393_v34 = vpop.xlane.xlu2 %392  ;;  %v399_v45 = vpop.xlane.xlu1 %398 }
  0xd9   : > { %v2057_v11 = vadd.f32 %v1015_v47, %v999_v56  ;;  %v2059_v18 = vadd.f32 %v1016_v48, %v1000_v7  ;;  %v1137_v37 = vperm.slane %v393_v34, %v2035_v17  ;;  %v1140_v48 = vperm.slane %v399_v45, %v2035_v17 }
  0xdb   : > { %v1052_v26 = vsel %vm1033_vm3, %v2057_v11, -inf  ;;  %v1055_v9 = vsel %vm1033_vm3, %v2059_v18, -inf  ;;  %v2078_v44 = vsel %vm1125_vm4, %v1137_v37, %v1136_v32  ;;  %v680_v37 = vperm.slane %v2004_v36, %v2032_v16 }
  0xdc   : > { %1053 = vmax.xlane.f32.xlu1 %v1052_v26  ;;  %1056 = vmax.xlane.f32.xlu0 %v1055_v9  ;;  %v396_v47 = vpop.xlane.xlu0 %395 }
  0xdd   : > { %v1139_v49 = vperm.slane %v396_v47, %v2032_v16 }
  0xde   : > { %v970_v13 = vpop.f32.mrf.mxu2  ;;  %v991_v28 = vpop.f32.mrf.mxu3 }
  0xdf   : > { %v2083_v56 = vsel %vm1125_vm4, %v1140_v48, %v1139_v49 }
  0xe0   : > { %v402_v55 = vpop.xlane.xlu2 %401  ;;  %v408_v7 = vpop.xlane.xlu1 %407 }
  0xe1   : > { %v1142_v60 = vperm.slane %v402_v55, %v2032_v16  ;;  %v1145_v6 = vperm.slane %v408_v7, %v2032_v16 }
  0xe4   : > { %v405_v2 = vpop.xlane.xlu0 %404 }
  0xe5   : > { %v1143_v10 = vperm.slane %v405_v2, %v2035_v17 }
  0xe7   : > { %v2090_v23 = vsel %vm1125_vm4, %v1143_v10, %v1142_v60  ;;  %v679_v60 = vperm.slane %v1992_v8, %v2032_v16  ;;  %v681_v10 = vperm.slane %v1990_v25, %v2032_v16 }
  0xe8   : > { %v411_v19 = vpop.xlane.xlu2 %410 }
  0xe9   : > { %v1146_v22 = vperm.slane %v411_v19, %v2035_v17 }
  0xeb   : > { %v2093_v26 = vsel %vm1125_vm4, %v1146_v22, %v1145_v6 }
 0x114   : > { %v602_v9 = vpop.xlane.xlu1 %601  ;;  %v599_v13 = vpop.xlane.xlu0 %598 }
 0x115   : > { %v622_v28 = vsub.f32 %v1954_v54, %v602_v9  ;;  %v621_v29 = vsub.f32 %v1952_v50, %v599_v13 }
 0x117   : > { %v631_v30 = vmul.f32 1.442695, %v622_v28  ;;  %v629_v31 = vmul.f32 1.442695, %v621_v29 }
 0x119   : > { %1573 = vpow2.f32 %v631_v30 }
 0x11a   : > { %1575 = vpow2.f32 %v629_v31 }
 0x11d   : > { %v605_v32 = vpop.xlane.xlu1 %604  ;;  %v608_v33 = vpop.xlane.xlu0 %607 }
 0x11e   : > { %v623_v17 = vsub.f32 %v1960_v62, %v605_v32  ;;  %v624_v34 = vsub.f32 %v1962_v63, %v608_v33  ;;  %v683_v32 = vperm.slane %v1998_v12, %v2032_v16  ;;  %v684_v12 = vperm.slane %v2008_v39, %v2032_v16 }
 0x11f   : > { %v1574_v45 = vpop.eup %1573 }
 0x120   : > { %v633_v47 = vmul.f32 1.442695, %v623_v17  ;;  %v635_v48 = vmul.f32 1.442695, %v624_v34  ;;  %v1576_v49 = vpop.eup %1575  ;;  %v648_v54 = vsel %vm596_vm2, %v1574_v45, 0.0  ;;  %v751_v50 = vmul.f32 %v1574_v45, %v680_v37 }
 0x121   : > { %649 = vadd.xlane.f32.xlu2 %v648_v54  ;;  %v645_v55 = vsel %vm596_vm2, %v1576_v49, 0.0  ;;  %v750_v7 = vmul.f32 %v1576_v49, %v679_v60  ;;  %v682_v45 = vperm.slane %v2002_v35, %v2032_v16 }
 0x122   : > { %1577 = vpow2.f32 %v633_v47  ;;  %646 = vadd.xlane.f32.xlu1 %v645_v55  ;;  %v761_v62 = vsel %vm596_vm2, %v751_v50, 0.0 }
 0x123   : > { %1579 = vpow2.f32 %v635_v48  ;;  %762 = vadd.xlane.f32.xlu0 %v761_v62  ;;  %v758_v8 = vsel %vm596_vm2, %v750_v7, 0.0 }
 0x124   : > { %v611_v36 = vpop.xlane.xlu2 %610 }
 0x125   : > { %v614_v63 = vpop.xlane.xlu1 %613  ;;  %v625_v6 = vsub.f32 %v1970_v14, %v611_v36 }
 0x126   : > { %v626_v2 = vsub.f32 %v1972_v15, %v614_v63 }
 0x127   : > { %v637_v22 = vmul.f32 1.442695, %v625_v6 }
 0x128   : > { %v1578_v19 = vpop.eup %1577  ;;  %v639_v28 = vmul.f32 1.442695, %v626_v2 }
 0x129   : > { %v1580_v9 = vpop.eup %1579  ;;  %v752_v13 = vmul.f32 %v1578_v19, %v681_v10  ;;  %759 = vadd.xlane.f32.xlu2 %v758_v8  ;;  %1581 = vpow2.f32 %v637_v22  ;;  %v651_v17 = vsel %vm596_vm2, %v1578_v19, 0.0  ;;  %v685_v22 = vperm.slane %v2020_v0, %v2032_v16 }
 0x12a   : > { %v654_v29 = vsel %vm596_vm2, %v1580_v9, 0.0  ;;  %1583 = vpow2.f32 %v639_v28  ;;  %v753_v49 = vmul.f32 %v1580_v9, %v682_v45 }
 0x12b   : > { %655 = vadd.xlane.f32.xlu1 %v654_v29  ;;  %v764_v30 = vsel %vm596_vm2, %v752_v13, 0.0 }
 0x12c   : > { %765 = vadd.xlane.f32.xlu0 %v764_v30  ;;  %v767_v63 = vsel %vm596_vm2, %v753_v49, 0.0 }
 0x12d   : > { %v617_v15 = vpop.xlane.xlu0 %616  ;;  %v620_v31 = vpop.xlane.xlu2 %619 }
 0x12e   : > { %v627_v14 = vsub.f32 %v1984_v20, %v617_v15  ;;  %v628_v34 = vsub.f32 %v1986_v21, %v620_v31 }
 0x12f   : > { %v1582_v33 = vpop.eup %1581 }
 0x130   : > { %v641_v25 = vmul.f32 1.442695, %v627_v14  ;;  %v754_v37 = vmul.f32 %v1582_v33, %v683_v32  ;;  %v657_v47 = vsel %vm596_vm2, %v1582_v33, 0.0  ;;  %v1584_v20 = vpop.eup %1583  ;;  %v643_v54 = vmul.f32 1.442695, %v628_v34 }
 0x131   : > { %652 = vadd.xlane.f32.xlu2 %v651_v17  ;;  %v755_v55 = vmul.f32 %v1584_v20, %v684_v12 }
 0x132   : > { %1585 = vpow2.f32 %v641_v25  ;;  %v770_v48 = vsel %vm596_vm2, %v754_v37, 0.0 }
 0x133   : > { %771 = vadd.xlane.f32.xlu1 %v770_v48  ;;  %1587 = vpow2.f32 %v643_v54  ;;  %v773_v2 = vsel %vm596_vm2, %v755_v55, 0.0 }
 0x134   : > { %658 = vadd.xlane.f32.xlu0 %v657_v47 }
 0x136   : > { %v1036_v50 = vpop.xlane.xlu2 %1035  ;;  %v1039_v21 = vpop.xlane.xlu0 %1038 }
 0x137   : > { %v1058_v60 = vsub.f32 %v2010_v40, %v1036_v50  ;;  %v1059_v35 = vsub.f32 %v2012_v41, %v1039_v21  ;;  %v660_v41 = vsel %vm596_vm2, %v1584_v20, 0.0 }
 0x138   : > { %v1586_v62 = vpop.eup %1585 }
 0x139   : > { %v1068_v36 = vmul.f32 1.442695, %v1059_v35  ;;  %768 = vadd.xlane.f32.xlu2 %v767_v63  ;;  %v1066_v7 = vmul.f32 1.442695, %v1058_v60  ;;  %v663_v39 = vsel %vm596_vm2, %v1586_v62, 0.0  ;;  %v2129_v10 = vpop.eup %1587  ;;  %v756_v30 = vmul.f32 %v1586_v62, %v685_v22 }
 0x13a   : > { %v666_v13 = vsel %vm596_vm2, %v2129_v10, 0.0 }
 0x13b   : > { %1589 = vpow2.f32 %v1068_v36  ;;  %664 = vadd.xlane.f32.xlu1 %v663_v39  ;;  %v776_v25 = vsel %vm596_vm2, %v756_v30, 0.0 }
 0x13c   : > { %774 = vadd.xlane.f32.xlu0 %v773_v2  ;;  %1591 = vpow2.f32 %v1066_v7 }
 0x13f   : > { %v1042_v6 = vpop.xlane.xlu2 %1041  ;;  %v1045_v9 = vpop.xlane.xlu1 %1044 }
 0x140   : > { %v1060_v40 = vsub.f32 %v2024_v1, %v1042_v6  ;;  %v1061_v1 = vsub.f32 %v2022_v5, %v1045_v9 }
 0x141   : > { %661 = vadd.xlane.f32.xlu2 %v660_v41  ;;  %v1590_v19 = vpop.eup %1589 }
 0x142   : > { %v1070_v8 = vmul.f32 1.442695, %v1060_v40  ;;  %v1085_v28 = vsel %vm1033_vm3, %v1590_v19, 0.0  ;;  %v1592_v29 = vpop.eup %1591  ;;  %v1072_v0 = vmul.f32 1.442695, %v1061_v1  ;;  %v1205_v5 = vmul.f32 %v1590_v19, %v2055_v46 }
 0x143   : > { %1086 = vadd.xlane.f32.xlu1 %v1085_v28  ;;  %v1204_v14 = vmul.f32 %v1592_v29, %v2052_v24  ;;  %v1082_v32 = vsel %vm1033_vm3, %v1592_v29, 0.0  ;;  %v412_v40 = vrot.slane %v1871_v52, 4 }
 0x144   : > { %667 = vadd.xlane.f32.xlu0 %v666_v13  ;;  %1593 = vpow2.f32 %v1070_v8  ;;  %v1215_v47 = vsel %vm1033_vm3, %v1205_v5, 0.0  ;;  %v686_v8 = vperm.slane %v2018_v61, %v2032_v16 }
 0x145   : > { %v1212_v17 = vsel %vm1033_vm3, %v1204_v14, 0.0  ;;  %1595 = vpow2.f32 %v1072_v0  ;;  %v413_v9 = vadd.f32 %v412_v40, %v1871_v52 }
 0x146   : > { %v1048_v15 = vpop.xlane.xlu0 %1047  ;;  %v757_v13 = vmul.f32 %v2129_v10, %v686_v8 }
 0x147   : > { %v1062_v31 = vsub.f32 %v2044_v42, %v1048_v15  ;;  %v1051_v33 = vpop.xlane.xlu2 %1050  ;;  %v414_v29 = vrot.slane %v413_v9, 2 }
 0x148   : > { %v1063_v37 = vsub.f32 %v2042_v38, %v1051_v33  ;;  %v779_v1 = vsel %vm596_vm2, %v757_v13, 0.0 }
 0x149   : > { %777 = vadd.xlane.f32.xlu2 %v776_v25  ;;  %v1074_v24 = vmul.f32 1.442695, %v1062_v31  ;;  %v415_v15 = vadd.f32 %v414_v29, %v413_v9 }
 0x14a   : > { %v1594_v34 = vpop.eup %1593  ;;  %v1076_v42 = vmul.f32 1.442695, %v1063_v37 }
 0x14b   : > { %1213 = vadd.xlane.f32.xlu1 %v1212_v17  ;;  %v1206_v45 = vmul.f32 %v1594_v34, %v2068_v27  ;;  %1597 = vpow2.f32 %v1074_v24  ;;  %v1088_v48 = vsel %vm1033_vm3, %v1594_v34, 0.0  ;;  %v1596_v12 = vpop.eup %1595  ;;  %v416_v52 = vrot.slane %v415_v15, 1 }
 0x14c   : > { %1083 = vadd.xlane.f32.xlu0 %v1082_v32  ;;  %1599 = vpow2.f32 %v1076_v42  ;;  %v1207_v38 = vmul.f32 %v1596_v12, %v2075_v43  ;;  %v1091_v50 = vsel %vm1033_vm3, %v1596_v12, 0.0 }
 0x14d   : > { %v1218_v49 = vsel %vm1033_vm3, %v1206_v45, 0.0  ;;  %v417_v0 = vadd.f32 %v416_v52, %v415_v15 }
 0x14e   : > { %v1221_v60 = vsel %vm1033_vm3, %v1207_v38, 0.0 }
 0x14f   : > { %v1054_v20 = vpop.xlane.xlu1 %1053  ;;  %v1057_v54 = vpop.xlane.xlu0 %1056 }
 0x150   : > { %v1064_v46 = vsub.f32 %v2057_v11, %v1054_v20  ;;  %v1065_v55 = vsub.f32 %v2059_v18, %v1057_v54 }
 0x151   : > { %1216 = vadd.xlane.f32.xlu2 %v1215_v47  ;;  %v1598_v27 = vpop.eup %1597 }
 0x152   : > { %v1078_v21 = vmul.f32 1.442695, %v1064_v46  ;;  %v1094_v35 = vsel %vm1033_vm3, %v1598_v27, 0.0  ;;  %v1600_v62 = vpop.eup %1599  ;;  %v1208_v11 = vmul.f32 %v1598_v27, %v2078_v44  ;;  %v1080_v63 = vmul.f32 1.442695, %v1065_v55 }
 0x153   : > { %1219 = vadd.xlane.f32.xlu1 %v1218_v49  ;;  %v1209_v43 = vmul.f32 %v1600_v62, %v2083_v56  ;;  %v1097_v7 = vsel %vm1033_vm3, %v1600_v62, 0.0  ;;  %v418_v56 = vrot.slane %v1886_v58, 4 }
 0x154   : > { %1089 = vadd.xlane.f32.xlu0 %v1088_v48  ;;  %1601 = vpow2.f32 %v1078_v21  ;;  %v1224_v36 = vsel %vm1033_vm3, %v1208_v11, 0.0 }
 0x155   : > { %1603 = vpow2.f32 %v1080_v63  ;;  %v1227_v2 = vsel %vm1033_vm3, %v1209_v43, 0.0 }
 0x159   : > { %1092 = vadd.xlane.f32.xlu2 %v1091_v50 }
 0x15a   : > { %v1602_v18 = vpop.eup %1601 }
 0x15b   : > { %1095 = vadd.xlane.f32.xlu1 %v1094_v35  ;;  %v1210_v39 = vmul.f32 %v1602_v18, %v2090_v23  ;;  %v1604_v6 = vpop.eup %1603  ;;  %v1100_v44 = vsel %vm1033_vm3, %v1602_v18, 0.0  ;;  %v419_v23 = vadd.f32 %v418_v56, %v1886_v58  ;;  %v430_v58 = vrot.slane %v1883_v57, 4 }
 0x15c   : > { %1222 = vadd.xlane.f32.xlu0 %v1221_v60  ;;  %v1103_v19 = vsel %vm1033_vm3, %v1604_v6, 0.0  ;;  %v1211_v22 = vmul.f32 %v1604_v6, %v2093_v26  ;;  %v424_v26 = vrot.slane %v1868_v51, 4  ;;  %v436_v35 = vrot.slane %v1874_v53, 4 }
 0x15d   : > { %v1230_v41 = vsel %vm1033_vm3, %v1210_v39, 0.0  ;;  %v420_v30 = vrot.slane %v419_v23, 2  ;;  %v431_v31 = vadd.f32 %v430_v58, %v1883_v57 }
 0x15e   : > { %v1233_v28 = vsel %vm1033_vm3, %v1211_v22, 0.0  ;;  %v425_v61 = vadd.f32 %v424_v26, %v1868_v51  ;;  %v437_v63 = vadd.f32 %v436_v35, %v1874_v53 }
 0x15f   : > { %v421_v14 = vadd.f32 %v420_v30, %v419_v23  ;;  %v432_v17 = vrot.slane %v431_v31, 2 }
 0x160   : > { %v426_v32 = vrot.slane %v425_v61, 2 }
 0x161   : > { %1225 = vadd.xlane.f32.xlu2 %v1224_v36  ;;  %v422_v25 = vrot.slane %v421_v14, 1  ;;  %v433_v5 = vadd.f32 %v432_v17, %v431_v31  ;;  %v438_v36 = vrot.slane %v437_v63, 2 }
 0x162   : > { %v427_v34 = vadd.f32 %v426_v32, %v425_v61 }
 0x163   : > { %1228 = vadd.xlane.f32.xlu1 %v1227_v2  ;;  %v423_v10 = vadd.f32 %v422_v25, %v421_v14  ;;  %v434_v24 = vrot.slane %v433_v5, 1  ;;  %v439_v2 = vadd.f32 %v438_v36, %v437_v63 }
 0x164   : > { %1098 = vadd.xlane.f32.xlu0 %v1097_v7  ;;  %v428_v37 = vrot.slane %v427_v34, 1 }
 0x165   : > { %v1287_v33 = vsel %vm687_vm5, %v423_v10, %v417_v0  ;;  %v435_v47 = vadd.f32 %v434_v24, %v433_v5  ;;  %v440_v6 = vrot.slane %v439_v2, 1 }
 0x166   : > { %v429_v45 = vadd.f32 %v428_v37, %v427_v34 }
 0x167   : > { %v441_v56 = vadd.f32 %v440_v6, %v439_v2 }
 0x168   : > { %v1288_v42 = vsel %vm688_vm6, %v429_v45, %v1287_v33 }
 0x169   : > { %1101 = vadd.xlane.f32.xlu2 %v1100_v44  ;;  %v1289_v51 = vsel %vm690_vm7, %v435_v47, %v1288_v42 }
 0x16b   : > { %1104 = vadd.xlane.f32.xlu1 %v1103_v19  ;;  %v2190_v19 = vsel %vm692_vm8, %v441_v56, %v1289_v51 }
 0x16c   : > { %1231 = vadd.xlane.f32.xlu0 %v1230_v41 }
 0x171   : > { %1234 = vadd.xlane.f32.xlu2 %v1233_v28 }
 0x173   : > { %780 = vadd.xlane.f32.xlu1 %v779_v1 }
 0x194   : > { %v650_v20 = vpop.xlane.xlu2 %649 }
 0x195   : > { %1605 = vrcp.f32 %v650_v20  ;;  %v647_v57 = vpop.xlane.xlu1 %646 }
 0x196   : > { %1607 = vrcp.f32 %v647_v57  ;;  %v763_v48 = vpop.xlane.xlu0 %762 }
 0x19b   : > { %v1606_v12 = vpop.eup %1605 }
 0x19c   : > { %v1608_v49 = vpop.eup %1607  ;;  %v791_v46 = vmul.f32 %v1606_v12, %v763_v48  ;;  %v760_v38 = vpop.xlane.xlu2 %759 }
 0x19d   : > { %v790_v54 = vmul.f32 %v1608_v49, %v760_v38 }
 0x19e   : > { %v807_v27 = vperm.slane %v791_v46, %v2032_v16  ;;  %v656_v55 = vpop.xlane.xlu1 %655 }
 0x19f   : > { %v766_v50 = vpop.xlane.xlu0 %765  ;;  %v806_v21 = vperm.slane %v790_v54, %v2032_v16 }
 0x1a1   : > { %v2185_v60 = vsel %vm687_vm5, %v807_v27, %v806_v21 }
 0x1a4   : > { %v653_v62 = vpop.xlane.xlu2 %652 }
 0x1a5   : > { %1609 = vrcp.f32 %v653_v62 }
 0x1a6   : > { %v772_v43 = vpop.xlane.xlu1 %771 }
 0x1a7   : > { %v659_v11 = vpop.xlane.xlu0 %658 }
 0x1ab   : > { %v1610_v1 = vpop.eup %1609 }
 0x1ac   : > { %v769_v7 = vpop.xlane.xlu2 %768  ;;  %v792_v10 = vmul.f32 %v1610_v1, %v766_v50 }
 0x1ae   : > { %v665_v39 = vpop.xlane.xlu1 %664  ;;  %v808_v42 = vperm.slane %v792_v10, %v2032_v16 }
 0x1af   : > { %v775_v18 = vpop.xlane.xlu0 %774 }
 0x1b0   : > { %v815_v50 = vsel %vm688_vm6, %v808_v42, %v2185_v60 }
 0x1b4   : > { %v662_v44 = vpop.xlane.xlu2 %661 }
 0x1b6   : > { %v1087_v41 = vpop.xlane.xlu1 %1086 }
 0x1b7   : > { %v668_v40 = vpop.xlane.xlu0 %667  ;;  %1611 = vrcp.f32 %v1087_v41 }
 0x1bc   : > { %v778_v22 = vpop.xlane.xlu2 %777 }
 0x1bd   : > { %v1612_v14 = vpop.eup %1611 }
 0x1be   : > { %v1214_v23 = vpop.xlane.xlu1 %1213 }
 0x1bf   : > { %v1084_v9 = vpop.xlane.xlu0 %1083 }
 0x1c0   : > { %1613 = vrcp.f32 %v1084_v9 }
 0x1c4   : > { %v1217_v8 = vpop.xlane.xlu2 %1216 }
 0x1c5   : > { %v1245_v32 = vmul.f32 %v1612_v14, %v1217_v8 }
 0x1c6   : > { %v1220_v13 = vpop.xlane.xlu1 %1219  ;;  %v1614_v26 = vpop.eup %1613 }
 0x1c7   : > { %v1090_v53 = vpop.xlane.xlu0 %1089  ;;  %v1244_v31 = vmul.f32 %v1614_v26, %v1214_v23  ;;  %v1261_v20 = vperm.slane %v1245_v32, %v2032_v16 }
 0x1c8   : > { %1615 = vrcp.f32 %v1090_v53 }
 0x1c9   : > { %v1260_v51 = vperm.slane %v1244_v31, %v2032_v16 }
 0x1cb   : > { %v1268_v21 = vsel %vm687_vm5, %v1261_v20, %v1260_v51 }
 0x1cc   : > { %v1093_v28 = vpop.xlane.xlu2 %1092 }
 0x1cd   : > { %1617 = vrcp.f32 %v1093_v28 }
 0x1ce   : > { %v1096_v30 = vpop.xlane.xlu1 %1095  ;;  %1619 = vrcp.f32 %v656_v55  ;;  %v1616_v25 = vpop.eup %1615 }
 0x1cf   : > { %v1223_v29 = vpop.xlane.xlu0 %1222  ;;  %1621 = vrcp.f32 %v659_v11  ;;  %v1246_v17 = vmul.f32 %v1616_v25, %v1220_v13 }
 0x1d0   : > { %1623 = vrcp.f32 %v1096_v30 }
 0x1d1   : > { %1625 = vrcp.f32 %v662_v44  ;;  %v1262_v57 = vperm.slane %v1246_v17, %v2032_v16 }
 0x1d3   : > { %v1618_v61 = vpop.eup %1617  ;;  %v1269_v35 = vsel %vm688_vm6, %v1262_v57, %v1268_v21 }
 0x1d4   : > { %v1226_v15 = vpop.xlane.xlu2 %1225  ;;  %v1620_v0 = vpop.eup %1619  ;;  %v1247_v5 = vmul.f32 %v1618_v61, %v1223_v29  ;;  %v448_v61 = vrot.slane %v1909_v4, 4 }
 0x1d5   : > { %v1622_v33 = vpop.eup %1621  ;;  %v793_v24 = vmul.f32 %v1620_v0, %v769_v7 }
 0x1d6   : > { %v1229_v58 = vpop.xlane.xlu1 %1228  ;;  %v1624_v34 = vpop.eup %1623  ;;  %v794_v12 = vmul.f32 %v1622_v33, %v772_v43  ;;  %v1263_v49 = vperm.slane %v1247_v5, %v2032_v16  ;;  %v449_v10 = vadd.f32 %v448_v61, %v1909_v4 }
 0x1d7   : > { %v1099_v52 = vpop.xlane.xlu0 %1098  ;;  %v1626_v37 = vpop.eup %1625  ;;  %v1248_v48 = vmul.f32 %v1624_v34, %v1226_v15  ;;  %v809_v54 = vperm.slane %v793_v24, %v2032_v16 }
 0x1d8   : > { %1627 = vrcp.f32 %v1099_v52  ;;  %v795_v27 = vmul.f32 %v1626_v37, %v775_v18  ;;  %v810_v63 = vperm.slane %v794_v12, %v2032_v16  ;;  %v1270_v36 = vsel %vm690_vm7, %v1263_v49, %v1269_v35 }
 0x1d9   : > { %1629 = vrcp.f32 %v665_v39  ;;  %v1264_v62 = vperm.slane %v1248_v48, %v2032_v16  ;;  %v816_v2 = vsel %vm690_vm7, %v809_v54, %v815_v50  ;;  %v450_v33 = vrot.slane %v449_v10, 2 }
 0x1da   : > { %v811_v60 = vperm.slane %v795_v27, %v2032_v16  ;;  %v817_v53 = vsel %vm692_vm8, %v810_v63, %v816_v2 }
 0x1db   : > { %v451_v5 = vadd.f32 %v450_v33, %v449_v10 }
 0x1dc   : > { %v1102_v45 = vpop.xlane.xlu2 %1101  ;;  %v818_v29 = vsel %vm694_vm9, %v811_v60, %v817_v53 }
 0x1dd   : > { %1631 = vrcp.f32 %v1102_v45  ;;  %v452_v45 = vrot.slane %v451_v5, 1 }
 0x1de   : > { %v1628_v47 = vpop.eup %1627  ;;  %v1105_v38 = vpop.xlane.xlu1 %1104 }
 0x1df   : > { %v1249_v46 = vmul.f32 %v1628_v47, %v1229_v58  ;;  %1633 = vrcp.f32 %v1105_v38  ;;  %v1630_v55 = vpop.eup %1629  ;;  %v1232_v18 = vpop.xlane.xlu0 %1231  ;;  %v442_v58 = vrot.slane %v1889_v59, 4  ;;  %v453_v42 = vadd.f32 %v452_v45, %v451_v5 }
 0x1e0   : > { %1635 = vrcp.f32 %v668_v40  ;;  %v796_v43 = vmul.f32 %v1630_v55, %v778_v22  ;;  %v1271_v40 = vsel %vm692_vm8, %v1264_v62, %v1270_v36 }
 0x1e1   : > { %v1265_v7 = vperm.slane %v1249_v46, %v2032_v16  ;;  %v443_v0 = vadd.f32 %v442_v58, %v1889_v59 }
 0x1e2   : > { %v812_v22 = vperm.slane %v796_v43, %v2032_v16 }
 0x1e3   : > { %v1632_v11 = vpop.eup %1631  ;;  %v1272_v8 = vsel %vm694_vm9, %v1265_v7, %v1271_v40  ;;  %v444_v32 = vrot.slane %v443_v0, 2 }
 0x1e4   : > { %v1250_v39 = vmul.f32 %v1632_v11, %v1232_v18  ;;  %v1235_v6 = vpop.xlane.xlu2 %1234  ;;  %v819_v14 = vsel %vm696_vm10, %v812_v22, %v818_v29 }
 0x1e5   : > { %v1634_v44 = vpop.eup %1633  ;;  %v445_v34 = vadd.f32 %v444_v32, %v443_v0 }
 0x1e6   : > { %v1266_v56 = vperm.slane %v1250_v39, %v2032_v16  ;;  %v1636_v41 = vpop.eup %1635  ;;  %v1251_v9 = vmul.f32 %v1634_v44, %v1235_v6  ;;  %v781_v23 = vpop.xlane.xlu1 %780 }
 0x1e7   : > { %v797_v13 = vmul.f32 %v1636_v41, %v781_v23  ;;  %v446_v24 = vrot.slane %v445_v34, 1 }
 0x1e8   : > { %v1273_v28 = vsel %vm696_vm10, %v1266_v56, %v1272_v8  ;;  %v1267_v30 = vperm.slane %v1251_v9, %v2032_v16 }
 0x1e9   : > { %v813_v1 = vperm.slane %v797_v13, %v2032_v16  ;;  %v454_v16 = vrot.slane %v1906_v3, 4  ;;  %v447_v59 = vadd.f32 %v446_v24, %v445_v34 }
 0x1ea   : > { %v1274_v15 = vsel %vm698_vm11, %v1267_v30, %v1273_v28 }
 0x1eb   : > { %v1276_v26 = vsel %vm596_vm2, %v1274_v15, 0.0  ;;  %v820_v52 = vsel %vm698_vm11, %v813_v1, %v819_v14  ;;  %v455_v31 = vadd.f32 %v454_v16, %v1906_v3  ;;  %v1291_v3 = vsel %vm694_vm9, %v447_v59, %v2190_v19 }
 0x1ec   : > { %1277 = vadd.xlane.f32.xlu1 %v1276_v26  ;;  %v822_v25 = vsel %vm596_vm2, %v820_v52, 0.0  ;;  %v1292_v51 = vsel %vm696_vm10, %v453_v42, %v1291_v3 }
 0x1ed   : > { %823 = vadd.xlane.f32.xlu0 %v822_v25  ;;  %v456_v17 = vrot.slane %v455_v31, 2 }
 0x1ef   : > { %v457_v37 = vadd.f32 %v456_v17, %v455_v31 }
 0x1f1   : > { %v458_v47 = vrot.slane %v457_v37, 1 }
 0x1f3   : > { %v459_v4 = vadd.f32 %v458_v47, %v457_v37 }
 0x1f5   : > { %v1293_v20 = vsel %vm698_vm11, %v459_v4, %v1292_v51 }
 0x1f6   : > { %1295 = vst.msk [vmem:[%s250_s8] sm:$0xff] %vm338_vm0, %v1293_v20 }
 0x1f7   : > { %1664 = shalt.err (!%p1661_p4)
}
 0x1f8   : > { %1534 = dma.vmem_to_hbm [thread:$0]  (%p1769_p5), %s1321_s9, 128, %s1323_s10, %s1300_s11   ;;  %vm1296_vm12 = vcmask 7168  }
 0x1f9   : > { %s287_s26 = scalar_lea.vmem %s2278_s5, %s1974_s15  ;;  %s283_s8 = scalar_lea.vmem %s2277_s4, %s1974_s15 }
 0x25f   : > { %v1278_v19 = vpop.xlane.xlu1 %1277 }
 0x260   : > { %1298 = vst.msk [vmem:[%s287_s26] sm:$0xff] %vm1296_vm12, %v1278_v19  ;;  %v824_v57 = vpop.xlane.xlu0 %823 }
 0x261   : > { %1297 = vst.msk [vmem:[%s283_s8] sm:$0xff] %vm1296_vm12, %v824_v57 }
 0x262 PF: > { %p1540_p7 = scmp.ge.s32.totalorder %s1699_s21, 2  ;;  %s1340_s28 = sand.u32 1, %s1687_s18  }
 0x263   : > { %s1341_s9 = scalar_lea.sflag [#allocation3], %s1340_s28 }
 0x264   : > { %p1537_p5 = pnand %p1540_p7, %p1773_p6 }
 0x266   : > { %p1538_p8 = pneg %p1537_p5 }
 0x268   : > { %1682 = dma.done.wait (%p1538_p8), %s1341_s9, 128  }
 0x269   : > { %1684 = vsyncadd (%p1538_p8), %s1341_s9, 4294967168  ;;  %p16_p9 = scmp.ge.s32.totalorder %s1756_s24, 4   ;;  %s2281_s18 = smov %s1691_s19 }
 0x26a   : > { %s2282_s19 = smov %s1695_s20  ;;  %s2283_s20 = smov %s1767_s27 }
 0x26b   : > { %s2284_s21 = smov %s1756_s24  ;;  %18 = sbr.rel (!%p16_p9) target bundleno = 3 (0x3), region = 97 }
 0x270   :  { %1361 = vsyncpa [#allocation3], 1 }
 0x271   :  { %1363 = vsyncpa [#allocation3 + $0x1], 1 }

</bundles_post_ra>
